<compile_context>
chip_gen: v7x
topology: tpu7x:2x2x1
jax: 0.10.0
libtpu: 0.0.40
codegen_flags: <defaults>
</compile_context>

<pallas_src>
import functools

import jax
import jax.numpy as jnp
from jax import lax
from jax.experimental import pallas as pl
from jax.experimental.pallas import tpu as pltpu

LANES = 128
_LOGITS_BLOCK_BYTES = 2 * 1024 * 1024  # ~2 MiB of f32 logits per grid step


def _dice_kernel(x_ref, t_ref, o_ref, inter_acc, card_acc, *,
                 smooth, num_classes, tile_s, total_s, needs_mask):
    s_blk = pl.program_id(1)

    @pl.when(s_blk == 0)
    def _init():
        inter_acc[...] = jnp.zeros_like(inter_acc)
        card_acc[...] = jnp.zeros_like(card_acc)

    logits = x_ref[0].astype(jnp.float32)            # (C, TILE_S)
    labels = t_ref[0]                                # (1, TILE_S) int32

    # Softmax over the class (sublane) axis — exact division to preserve
    # reference-level accuracy.
    m = jnp.max(logits, axis=0, keepdims=True)       # (1, TILE_S)
    e = jnp.exp(logits - m)                          # EUP
    p = e / jnp.sum(e, axis=0, keepdims=True)        # (C, TILE_S)

    # One-hot targets built in-register (never stored to HBM).
    cls = lax.broadcasted_iota(jnp.int32, (num_classes, tile_s), 0)
    t1h = (cls == labels).astype(jnp.float32)        # (C, TILE_S)

    if needs_mask:
        # Zero the padded tail of the last spatial block.
        col = lax.broadcasted_iota(jnp.int32, (1, tile_s), 1) + s_blk * tile_s
        valid = (col < total_s).astype(jnp.float32)
        p = p * valid
        t1h = t1h * valid

    # Pure-VPU vector accumulation; cross-lane reduce deferred to the last block.
    inter_acc[...] += p * t1h
    card_acc[...] += p + t1h                         # fused cardinality accumulator

    @pl.when(s_blk == pl.num_programs(1) - 1)
    def _finalize():
        inter = jnp.sum(inter_acc[...], axis=-1, keepdims=True)  # (C, 1)
        card = jnp.sum(card_acc[...], axis=-1, keepdims=True)    # (C, 1)
        dice = (2.0 * inter) / (card + smooth)
        o_ref[...] = dice.reshape(1, num_classes, 1)


def multiclass_dice_loss(inputs, targets, weight=None, reduction="mean",
                         smooth=1e-08):
    """inputs: (N, C, *spatial) logits; targets: (N, *spatial) int class ids."""
    N, C = inputs.shape[0], inputs.shape[1]
    S = 1
    for d in inputs.shape[2:]:
        S *= d

    x = inputs.reshape(N, C, S)
    t = targets.reshape(N, 1, S).astype(jnp.int32)

    # Spatial tile: full extent if it fits the budget (a full-extent last block
    # dim is always legal — no padding needed), otherwise a lane-aligned cap.
    ts_cap = max(LANES, (_LOGITS_BLOCK_BYTES // (4 * C)) // LANES * LANES)
    if S <= ts_cap:
        tile_s, s_pad, needs_mask = S, S, False
    else:
        tile_s = ts_cap
        s_pad = pl.cdiv(S, tile_s) * tile_s
        needs_mask = s_pad != S
        if needs_mask:
            x = jnp.pad(x, ((0, 0), (0, 0), (0, s_pad - S)))
            t = jnp.pad(t, ((0, 0), (0, 0), (0, s_pad - S)))

    grid = (N, s_pad // tile_s)

    kernel = functools.partial(
        _dice_kernel,
        smooth=float(smooth),
        num_classes=C,
        tile_s=tile_s,
        total_s=S,
        needs_mask=needs_mask,
    )

    dice = pl.pallas_call(
        kernel,
        out_shape=jax.ShapeDtypeStruct((N, C, 1), jnp.float32),
        grid_spec=pltpu.PrefetchScalarGridSpec(
            num_scalar_prefetch=0,
            grid=grid,
            in_specs=[
                pl.BlockSpec((1, C, tile_s), lambda n, s: (n, 0, s)),
                pl.BlockSpec((1, 1, tile_s), lambda n, s: (n, 0, s)),
            ],
            out_specs=pl.BlockSpec((1, C, 1), lambda n, s: (n, 0, 0)),
            scratch_shapes=[
                pltpu.VMEM((C, tile_s), jnp.float32),   # intersection accumulator
                pltpu.VMEM((C, tile_s), jnp.float32),   # cardinality accumulator
            ],
        ),
        compiler_params=pltpu.CompilerParams(
            dimension_semantics=("parallel", "arbitrary")),
    )(x, t)

    dice = dice.reshape(N, C)
    if weight is None:
        weight = jnp.ones((C,), jnp.float32)
    loss = 1.0 - dice * weight
    if reduction == "mean":
        return loss.mean()
    elif reduction == "sum":
        return loss.sum()
    return loss


def multiclass_dice_loss_ref(inputs, targets, weight=None, reduction="mean",
                             smooth=1e-08):
    N, C = inputs.shape[0], inputs.shape[1]
    if weight is None:
        weight = jnp.ones((C,), jnp.float32)
    p = jax.nn.softmax(inputs.astype(jnp.float32), axis=1)
    t1h = jax.nn.one_hot(targets, C, dtype=jnp.float32)      # (N, ..., C)
    t1h = jnp.moveaxis(t1h, -1, 1)                           # (N, C, ...)
    p = p.reshape(N, C, -1)
    t1h = t1h.reshape(N, C, -1)
    inter = jnp.sum(p * t1h, axis=-1)
    card = jnp.sum(p, axis=-1) + jnp.sum(t1h, axis=-1)
    dice = 2.0 * inter / (card + smooth)
    loss = 1.0 - dice * weight
    if reduction == "mean":
        return loss.mean()
    elif reduction == "sum":
        return loss.sum()
    return loss


if __name__ == "__main__":
    key = jax.random.PRNGKey(0)
    k1, k2 = jax.random.split(key)
    N, C, H, W = 2, 4, 16, 16
    logits = jax.random.normal(k1, (N, C, H, W), jnp.float32)
    targets = jax.random.randint(k2, (N, H, W), 0, C)

    loss = jax.block_until_ready(multiclass_dice_loss(logits, targets))
    ref = jax.block_until_ready(multiclass_dice_loss_ref(logits, targets))

    assert jnp.allclose(loss, ref, rtol=1e-5, atol=1e-6), (loss, ref)
    print("KERNEL_OK")
</pallas_src>

<mosaic_0001>
module attributes {stable_mosaic.version = 11 : i64} {
  func.func @_dice_kernel(%arg0: i32, %arg1: i32, %arg2: memref<1x4x256xf32, #tpu.memory_space<vmem>>, %arg3: memref<1x1x256xi32, #tpu.memory_space<vmem>>, %arg4: memref<1x4x1xf32, #tpu.memory_space<vmem>>, %arg5: memref<4x256xf32, #tpu.memory_space<vmem>>, %arg6: memref<4x256xf32, #tpu.memory_space<vmem>>) attributes {dimension_semantics = [#tpu.dimension_semantics<parallel>, #tpu.dimension_semantics<arbitrary>], iteration_bounds = array<i64: 2, 1>, scalar_prefetch = 0 : i64, scratch_operands = 2 : i64, tpu.core_type = #tpu.core_type<tc>, window_params = [{transform_indices = @transform_0, window_bounds = array<i64: 1, 4, 256>}, {transform_indices = @transform_1, window_bounds = array<i64: 1, 1, 256>}, {transform_indices = @transform_2, window_bounds = array<i64: 1, 4, 1>}]} {
    %c0_i32 = arith.constant 0 : i32
    %0 = arith.cmpi eq, %arg1, %c0_i32 : i32
    %1 = arith.extui %0 : i1 to i32
    %c0_i32_0 = arith.constant 0 : i32
    %2 = arith.cmpi ne, %1, %c0_i32_0 : i32
    scf.if %2 {
      %cst_17 = arith.constant 0.000000e+00 : f32
      %32 = vector.broadcast %cst_17 : f32 to vector<4x256xf32>
      %c0_18 = arith.constant 0 : index
      %c0_19 = arith.constant 0 : index
      %33 = vector.load %arg5[%c0_18, %c0_19] : memref<4x256xf32, #tpu.memory_space<vmem>>, vector<4x256xf32>
      tpu.vector_store %arg5[%c0_18, %c0_19], %32 {strides = array<i32>} : memref<4x256xf32, #tpu.memory_space<vmem>>, vector<4x256xf32>,
      %cst_20 = arith.constant 0.000000e+00 : f32
      %34 = vector.broadcast %cst_20 : f32 to vector<4x256xf32>
      %c0_21 = arith.constant 0 : index
      %c0_22 = arith.constant 0 : index
      %35 = vector.load %arg6[%c0_21, %c0_22] : memref<4x256xf32, #tpu.memory_space<vmem>>, vector<4x256xf32>
      tpu.vector_store %arg6[%c0_21, %c0_22], %34 {strides = array<i32>} : memref<4x256xf32, #tpu.memory_space<vmem>>, vector<4x256xf32>,
    } else {
    }
    %c0 = arith.constant 0 : index
    %c0_1 = arith.constant 0 : index
    %c0_2 = arith.constant 0 : index
    %3 = vector.load %arg2[%c0, %c0_1, %c0_2] : memref<1x4x256xf32, #tpu.memory_space<vmem>>, vector<1x4x256xf32>
    %4 = vector.shape_cast %3 : vector<1x4x256xf32> to vector<4x256xf32>
    %c0_3 = arith.constant 0 : index
    %c0_4 = arith.constant 0 : index
    %c0_5 = arith.constant 0 : index
    %5 = vector.load %arg3[%c0_3, %c0_4, %c0_5] : memref<1x1x256xi32, #tpu.memory_space<vmem>>, vector<1x1x256xi32>
    %6 = vector.shape_cast %5 : vector<1x1x256xi32> to vector<1x256xi32>
    %cst = arith.constant dense<0xFF800000> : vector<256xf32>
    %7 = vector.multi_reduction <maximumf>, %4, %cst [0] : vector<4x256xf32> to vector<256xf32>
    %8 = vector.shape_cast %7 : vector<256xf32> to vector<1x256xf32>
    %9 = vector.broadcast %8 : vector<1x256xf32> to vector<4x256xf32>
    %10 = arith.subf %4, %9 : vector<4x256xf32>
    %11 = math.exp %10 : vector<4x256xf32>
    %cst_6 = arith.constant dense<0.000000e+00> : vector<256xf32>
    %12 = vector.multi_reduction <add>, %11, %cst_6 [0] : vector<4x256xf32> to vector<256xf32>
    %13 = vector.shape_cast %12 : vector<256xf32> to vector<1x256xf32>
    %14 = vector.broadcast %13 : vector<1x256xf32> to vector<4x256xf32>
    %15 = arith.divf %11, %14 : vector<4x256xf32>
    %16 = tpu.iota {dimensions = array<i32: 0>} : vector<4x256xi32>
    %17 = vector.broadcast %6 : vector<1x256xi32> to vector<4x256xi32>
    %18 = arith.cmpi eq, %16, %17 : vector<4x256xi32>
    %19 = arith.extui %18 : vector<4x256xi1> to vector<4x256xi32>
    %20 = arith.sitofp %19 : vector<4x256xi32> to vector<4x256xf32>
    %c0_7 = arith.constant 0 : index
    %c0_8 = arith.constant 0 : index
    %21 = vector.load %arg5[%c0_7, %c0_8] : memref<4x256xf32, #tpu.memory_space<vmem>>, vector<4x256xf32>
    %22 = arith.mulf %15, %20 : vector<4x256xf32>
    %23 = arith.addf %21, %22 : vector<4x256xf32>
    %c0_9 = arith.constant 0 : index
    %c0_10 = arith.constant 0 : index
    %24 = vector.load %arg5[%c0_9, %c0_10] : memref<4x256xf32, #tpu.memory_space<vmem>>, vector<4x256xf32>
    tpu.vector_store %arg5[%c0_9, %c0_10], %23 {strides = array<i32>} : memref<4x256xf32, #tpu.memory_space<vmem>>, vector<4x256xf32>,
    %c0_11 = arith.constant 0 : index
    %c0_12 = arith.constant 0 : index
    %25 = vector.load %arg6[%c0_11, %c0_12] : memref<4x256xf32, #tpu.memory_space<vmem>>, vector<4x256xf32>
    %26 = arith.addf %15, %20 : vector<4x256xf32>
    %27 = arith.addf %25, %26 : vector<4x256xf32>
    %c0_13 = arith.constant 0 : index
    %c0_14 = arith.constant 0 : index
    %28 = vector.load %arg6[%c0_13, %c0_14] : memref<4x256xf32, #tpu.memory_space<vmem>>, vector<4x256xf32>
    tpu.vector_store %arg6[%c0_13, %c0_14], %27 {strides = array<i32>} : memref<4x256xf32, #tpu.memory_space<vmem>>, vector<4x256xf32>,
    %c0_i32_15 = arith.constant 0 : i32
    %29 = arith.cmpi eq, %arg1, %c0_i32_15 : i32
    %30 = arith.extui %29 : i1 to i32
    %c0_i32_16 = arith.constant 0 : i32
    %31 = arith.cmpi ne, %30, %c0_i32_16 : i32
    scf.if %31 {
      %c0_17 = arith.constant 0 : index
      %c0_18 = arith.constant 0 : index
      %32 = vector.load %arg5[%c0_17, %c0_18] : memref<4x256xf32, #tpu.memory_space<vmem>>, vector<4x256xf32>
      %cst_19 = arith.constant dense<0.000000e+00> : vector<4xf32>
      %33 = vector.multi_reduction <add>, %32, %cst_19 [1] : vector<4x256xf32> to vector<4xf32>
      %34 = vector.shape_cast %33 : vector<4xf32> to vector<4x1xf32>
      %c0_20 = arith.constant 0 : index
      %c0_21 = arith.constant 0 : index
      %35 = vector.load %arg6[%c0_20, %c0_21] : memref<4x256xf32, #tpu.memory_space<vmem>>, vector<4x256xf32>
      %cst_22 = arith.constant dense<0.000000e+00> : vector<4xf32>
      %36 = vector.multi_reduction <add>, %35, %cst_22 [1] : vector<4x256xf32> to vector<4xf32>
      %37 = vector.shape_cast %36 : vector<4xf32> to vector<4x1xf32>
      %cst_23 = arith.constant 2.000000e+00 : f32
      %38 = vector.broadcast %cst_23 : f32 to vector<4x1xf32>
      %39 = arith.mulf %38, %34 : vector<4x1xf32>
      %cst_24 = arith.constant 9.99999993E-9 : f32
      %40 = vector.broadcast %cst_24 : f32 to vector<4x1xf32>
      %41 = arith.addf %37, %40 : vector<4x1xf32>
      %42 = arith.divf %39, %41 : vector<4x1xf32>
      %43 = vector.shape_cast %42 : vector<4x1xf32> to vector<1x4x1xf32>
      %c0_25 = arith.constant 0 : index
      %c0_26 = arith.constant 0 : index
      %c0_27 = arith.constant 0 : index
      %44 = vector.load %arg4[%c0_25, %c0_26, %c0_27] : memref<1x4x1xf32, #tpu.memory_space<vmem>>, vector<1x4x1xf32>
      tpu.vector_store %arg4[%c0_25, %c0_26, %c0_27], %43 {strides = array<i32>} : memref<1x4x1xf32, #tpu.memory_space<vmem>>, vector<1x4x1xf32>,
    } else {
    }
    return
  }
  func.func @transform_0(%arg0: i32, %arg1: i32) -> (i32, i32, i32) {
    %c0_i32 = arith.constant 0 : i32
    %c0_i32_0 = arith.constant 0 : i32
    return %arg0, %c0_i32, %arg1 : i32, i32, i32
  }
  func.func @transform_1(%arg0: i32, %arg1: i32) -> (i32, i32, i32) {
    %c0_i32 = arith.constant 0 : i32
    %c0_i32_0 = arith.constant 0 : i32
    return %arg0, %c0_i32, %arg1 : i32, i32, i32
  }
  func.func @transform_2(%arg0: i32, %arg1: i32) -> (i32, i32, i32) {
    %c0_i32 = arith.constant 0 : i32
    %c0_i32_0 = arith.constant 0 : i32
    %c0_i32_1 = arith.constant 0 : i32
    return %arg0, %c0_i32, %c0_i32_0 : i32, i32, i32
  }
}

</mosaic_0001>

<bundles_post_ra>
// kernel: tpu_custom_call.1
= control target key start
LH: loop header
LB: loop body
LE: loop exit
PB: predicated region body
PF: predicated region fallthrough
CT: control target
= control target key end

     0   :  { %7 = vsyncpa [#allocation5], 0  ;;  %s832_s0 = inlined_call_operand.hbm [shape: f32[2,4,256], index: 0, kind: input, shape index: {}]   ;;  %s833_s1 = inlined_call_operand.hbm [shape: s32[2,1,256], index: 1, kind: input, shape index: {}]   ;;  %s834_s2 = inlined_call_operand.vmem [shape: f32[2,4,1], index: 2, kind: output, shape index: {}]  }
   0x1   :  { %9 = vsyncpa [#allocation5 + $0x1], 0 }
   0x2   :  { %10 = vsyncpa [#allocation7], 0 }
   0x3   :  { %12 = vsyncpa [#allocation7 + $0x1], 0  ;;  %s655_s9 = smov 0   ;;  %s657_s10 = smov 0  }
   0x4   :  { %s659_s11 = smov 0   ;;  %s661_s12 = smov 0  }
   0x5   :  { %s663_s13 = smov 0   ;;  %s665_s14 = smov 0  }
   0x6 LB: > { %s433_s15 = sadd.s32 4294967295, %s635_s14   ;;  %s30_s16 = sadd.s32 1, %s631_s13  ;;  %s635_s14 = sphi %s665_s14, %s18_s14   ;;  %s631_s13 = sphi %s663_s13, %s848_s13   ;;  %s627_s12 = sphi %s661_s12, %s847_s12   ;;  %s623_s11 = sphi %s659_s11, %s846_s11   ;;  %s619_s10 = sphi %s657_s10, %s845_s10   ;;  %s615_s9 = sphi %s655_s9, %s844_s9  }
   0x7   : > { %p32_p0 = scmp.ge.s32.totalorder %s30_s16, 2  ;;  %s39_s17 = sadd.s32 1, %s623_s11 }
   0x8   : > { %p46_p1 = scmp.ne.s32.totalorder %s623_s11, %s619_s10  ;;  %p47_p2 = scmp.eq.s32.totalorder %s635_s14, 0 }
   0x9   : > { %s850_s16 = smov (%p32_p0, %s30_s16), 0  ;;  %p52_p4 = scmp.ne.s32.totalorder %s619_s10, %s615_s9 }
   0xa   : > { %p691_p3 = por %p47_p2, %p46_p1  ;;  %s34_s19 = ssub.s32 %s631_s13, %s850_s16 }
   0xb   : > { %p53_p5 = scmp.eq.s32.totalorder %s433_s15, 0  ;;  %p37_p6 = scmp.eq.s32.totalorder %s34_s19, 0 }
   0xc   : > { %p464_p8 = scmp.lt.s32.totalorder %s635_s14, 2  ;;  %s707_s22 = sand.u32 1, %s623_s11  }
   0xd   : > { %p698_p7 = por %p53_p5, %p52_p4  ;;  %s451_s23 = sshll.u32 %s631_s13, 7 }
   0xe   : > { %s704_s21 = scalar_select %p37_p6, %s623_s11, %s39_s17  }
   0xf   : > { %s837_s20 = scalar_select %p698_p7, 1, 0 }
  0x10   : > { %s437_s24 = sshll.u32 %s707_s22, 3  ;;  %s714_s27 = scalar_lea.hbm %s832_s0, %s451_s23 }
  0x11   : > { %s134_s28 = scalar_lea.vmem [#allocation4], %s437_s24  ;;  %p718_p9 = pnand %p464_p8, %p691_p3 }
  0x12   : > { %s144_s29 = sshll.u32 %s134_s28, 4  ;;  %s131_s3 = scalar_lea.sflag [#allocation5], %s707_s22  ;;  %s722_s29 = int_to_ptr.vmem [resolvable:$true] %s144_s29 }
  0x13   : > { %s521_s4 = scalar_lea.hbm %s714_s27, 128  ;;  %p523_p13 = pneg %p718_p9 }
  0x14   : > { %p522_p12 = scmp.ne.s32.totalorder %s714_s27, %s521_s4  ;;  %s526_s7 = scalar_lea.hbm %s832_s0, 256 }
  0x15   : > { %p527_p2 = scmp.lt.u32.totalorder %s714_s27, %s832_s0  ;;  %p528_p3 = scmp.lt.u32.totalorder %s526_s7, %s521_s4 }
  0x16   : > { %p524_p0 = pnand %p523_p13, %p522_p12  ;;  %p530_p5 = scmp.lt.u32.totalorder %s521_s4, %s714_s27 }
  0x17   : > { %p529_p4 = por %p528_p3, %p527_p2 }
  0x18   : > { %p525_p1 = pneg %p524_p0 }
  0x19   : > { %p531_p6 = por %p530_p5, %p529_p4 }
  0x1b   : > { %p532_p8 = pnand %p531_p6, %p525_p1 }
  0x1d   : > { %535 = shalt.err (!%p532_p8)
}
  0x1e   : > { %s536_s15 = scalar_lea.vmem %s722_s29, 128  ;;  %s637_s17 = smov [#allocation4]  }
  0x1f   : > { %p537_p12 = scmp.ne.s32.totalorder %s722_s29, %s536_s15  ;;  %s541_s18 = sshll.u32 %s637_s17, 4  ;;  %s542_s18 = int_to_ptr.vmem [resolvable:$false] %s541_s18 }
  0x20   : > { %s543_s19 = scalar_lea.vmem %s542_s18, 256  ;;  %p544_p11 = scmp.lt.s32.totalorder %s722_s29, %s542_s18 }
  0x21   : > { %p539_p0 = pnand %p537_p12, %p523_p13  ;;  %p545_p2 = scmp.lt.s32.totalorder %s543_s19, %s536_s15 }
  0x23   : > { %p540_p10 = pneg %p539_p0  ;;  %p546_p3 = por %p545_p2, %p544_p11 }
  0x25   : > { %p547_p4 = pnand %p546_p3, %p540_p10 }
  0x27   : > { %550 = shalt.err (!%p547_p4)
}
  0x28   : > { %460 = dma.hbm_to_vmem [thread:$0]  (!%p718_p9), %s714_s27, 128, %s722_s29, %s131_s3  }
  0x29   : > { %p839_p1 = scmp.lt.s32.totalorder %s635_s14, 3  ;;  %p840_p5 = scmp.ge.s32.totalorder %s635_s14, 1 }
  0x2a   : > { %s440_s24 = sshll.u32 %s707_s22, 1  ;;  %s452_s25 = sshll.u32 %s631_s13, 5 }
  0x2b   : > { %p756_p6 = pnand %p840_p5, %p839_p1  ;;  %s765_s4 = scalar_lea.hbm %s833_s1, %s452_s25 }
  0x2c   : > { %s155_s5 = scalar_lea.vmem [#allocation6], %s440_s24  ;;  %s152_s27 = scalar_lea.sflag [#allocation7], %s707_s22 }
  0x2d   : > { %s841_s23 = scalar_select %p756_p6, 1, 0 }
  0x2e   : > { %s165_s6 = sshll.u32 %s155_s5, 4  ;;  %s551_s29 = scalar_lea.hbm %s765_s4, 32  ;;  %s166_s6 = int_to_ptr.vmem [resolvable:$true] %s165_s6 }
  0x2f   : > { %p552_p10 = scmp.ne.s32.totalorder %s765_s4, %s551_s29  ;;  %s556_s8 = scalar_lea.hbm %s833_s1, 64 }
  0x30   : > { %p557_p12 = scmp.lt.u32.totalorder %s765_s4, %s833_s1  ;;  %p558_p0 = scmp.lt.u32.totalorder %s556_s8, %s551_s29 }
  0x31   : > { %p554_p11 = pnand %p552_p10, %p523_p13  ;;  %p560_p3 = scmp.lt.u32.totalorder %s551_s29, %s765_s4 }
  0x32   : > { %p559_p2 = por %p558_p0, %p557_p12 }
  0x33   : > { %p555_p8 = pneg %p554_p11 }
  0x34   : > { %p561_p4 = por %p560_p3, %p559_p2 }
  0x36   : > { %p562_p1 = pnand %p561_p4, %p555_p8 }
  0x38   : > { %565 = shalt.err (!%p562_p1)
}
  0x39   : > { %s566_s22 = scalar_lea.vmem %s166_s6, 32  ;;  %s638_s17 = smov [#allocation6]  }
  0x3a   : > { %p567_p5 = scmp.ne.s32.totalorder %s166_s6, %s566_s22  ;;  %s571_s18 = sshll.u32 %s638_s17, 4  ;;  %s572_s18 = int_to_ptr.vmem [resolvable:$false] %s571_s18 }
  0x3b   : > { %s573_s19 = scalar_lea.vmem %s572_s18, 64  ;;  %p574_p7 = scmp.lt.s32.totalorder %s166_s6, %s572_s18 }
  0x3c   : > { %p569_p10 = pnand %p567_p5, %p523_p13  ;;  %p575_p6 = scmp.lt.s32.totalorder %s573_s19, %s566_s22 }
  0x3e   : > { %p570_p11 = pneg %p569_p10  ;;  %p576_p0 = por %p575_p6, %p574_p7 }
  0x40   : > { %p577_p12 = pnand %p576_p0, %p570_p11 }
  0x42   : > { %580 = shalt.err (!%p577_p12)
}
  0x43   : > { %463 = dma.hbm_to_vmem [thread:$0]  (!%p718_p9), %s765_s4, 32, %s166_s6, %s152_s27  }
  0x44   : > { %p842_p8 = scmp.ne.s32.totalorder %s841_s23, 0 }
  0x45   : > { %s176_s24 = sand.u32 (!%p842_p8), 1, %s619_s10   ;;  %p843_p13 = scmp.ne.s32.totalorder (!%p842_p8), %s837_s20, 0 }
  0x46   : > { %174 = sbr.rel (%p842_p8) target bundleno = 309 (0x135), region = 28  ;;  %s444_s25 = sshll.u32 (!%p842_p8), %s176_s24, 3 }
  0x47   : > { %s177_s26 = scalar_lea.sflag (!%p842_p8), [#allocation5], %s176_s24  ;;  %s180_s28 = scalar_lea.vmem (!%p842_p8), [#allocation4], %s444_s25 }
  0x4d   : > { %606 = dma.done.wait (%p843_p13), %s177_s26, 128  }
  0x4e   : > { %608 = vsyncadd (%p843_p13), %s177_s26, 4294967168  ;;  %s445_s5 = sshll.u32 %s176_s24, 1  ;;  %s186_s29 = scalar_lea.sflag [#allocation7], %s176_s24 }
  0x4f   : > { %s794_s30 = scalar_lea.vmem [#allocation6], %s445_s5 }
  0x50   : > { %610 = dma.done.wait (%p843_p13), %s186_s29, 32  }
  0x51   : > { %612 = vsyncadd (%p843_p13), %s186_s29, 4294967264  ;;  %vm231_vm0 = vcmask 1043456   ;;  %v226_v0 = vld [vmem:[%s180_s28] sm:$0xff]  ;;  %v276_v26 = vlaneseq  ;;  %v227_v38 = vld [vmem:[%s794_s30] sm:$0x3]  ;;  %v639_v43 = vmov 0.0  }
  0x52   : > { %v229_v1 = vcombine.high %v226_v0, %v226_v0  ;;  %v232_v2 = vsel %vm231_vm0, %v226_v0, -inf  ;;  %p216_p7 = scmp.lt.s32.totalorder %s627_s12, 1  ;;  %vm329_vm3 = vcmask 3072  }
  0x53   : > { %v233_v3 = vrot.slane %v232_v2, 4  ;;  %v277_v31 = vshrl.u32 %v276_v26, 7 }
  0x54   : > { %v239_v4 = vsel %vm231_vm0, %v229_v1, -inf  ;;  %s852_s12 = smov (!%p216_p7, %s627_s12), 1 }
  0x55   : > { %v234_v5 = vmax.f32 %v232_v2, %v233_v3  ;;  %v240_v6 = vrot.slane %v239_v4, 4  ;;  %v280_v36 = vsub.s32 0, %v277_v31  ;;  %v284_v37 = vsub.s32 1, %v277_v31  ;;  %s446_s20 = sshll.u32 %s852_s12, 2 }
  0x56   : > { %s219_s6 = scalar_lea.vmem %s834_s2, %s446_s20 }
  0x57   : > { %v235_v7 = vrot.slane %v234_v5, 2  ;;  %v241_v8 = vmax.f32 %v239_v4, %v240_v6  ;;  %v281_v41 = vrot.slane %v227_v38, %v280_v36  ;;  %v285_v42 = vrot.slane %v227_v38, %v284_v37 }
  0x59   : > { %v236_v9 = vmax.f32 %v234_v5, %v235_v7  ;;  %v242_v10 = vrot.slane %v241_v8, 2  ;;  %vm286_vm1 = vcmp.eq.s32.totalorder %v277_v31, %v281_v41  ;;  %vm287_vm2 = vcmp.eq.s32.totalorder %v277_v31, %v285_v42 }
  0x5a   : > { %v447_v44 = vsel %vm286_vm1, 1.0, %v639_v43  ;;  %v448_v45 = vsel %vm287_vm2, 1.0, %v639_v43 }
  0x5b   : > { %v237_v11 = vrot.slane %v236_v9, 1  ;;  %v243_v12 = vmax.f32 %v241_v8, %v242_v10  ;;  %v295_v46 = vcombine.low %v447_v44, %v448_v45 }
  0x5d   : > { %v238_v13 = vmax.f32 %v236_v9, %v237_v11  ;;  %v244_v14 = vrot.slane %v243_v12, 1 }
  0x5f   : > { %v245_v15 = vmax.f32 %v243_v12, %v244_v14 }
  0x61   : > { %v248_v16 = vcombine.low %v238_v13, %v245_v15 }
  0x63   : > { %v250_v17 = vsub.f32 %v226_v0, %v248_v16 }
  0x65   : > { %v251_v18 = vmul.f32 1.442695, %v250_v17 }
  0x67   : > { %515 = vpow2.f32 %v251_v18 }
  0x71   : > { %v516_v19 = vpop.eup %515 }
  0x72   : > { %v254_v20 = vcombine.high %v516_v19, %v516_v19  ;;  %v256_v21 = vsel %vm231_vm0, %v516_v19, 0.0 }
  0x73   : > { %v257_v22 = vrot.slane %v256_v21, 4 }
  0x74   : > { %v263_v23 = vsel %vm231_vm0, %v254_v20, 0.0 }
  0x75   : > { %v258_v24 = vadd.f32 %v257_v22, %v256_v21  ;;  %v264_v25 = vrot.slane %v263_v23, 4 }
  0x77   : > { %v259_v27 = vrot.slane %v258_v24, 2  ;;  %v265_v28 = vadd.f32 %v264_v25, %v263_v23 }
  0x79   : > { %v260_v29 = vadd.f32 %v259_v27, %v258_v24  ;;  %v266_v30 = vrot.slane %v265_v28, 2 }
  0x7b   : > { %v261_v32 = vrot.slane %v260_v29, 1  ;;  %v267_v33 = vadd.f32 %v266_v30, %v265_v28 }
  0x7d   : > { %v262_v34 = vadd.f32 %v261_v32, %v260_v29  ;;  %v268_v35 = vrot.slane %v267_v33, 1 }
  0x7f   : > { %v269_v39 = vadd.f32 %v268_v35, %v267_v33 }
  0x81   : > { %v272_v40 = vcombine.low %v262_v34, %v269_v39 }
  0x83   : > { %517 = vrcp.f32 %v272_v40 }
  0x8d   : > { %v518_v47 = vpop.eup %517 }
  0x8e   : > { %v275_v48 = vmul.f32 %v518_v47, %v516_v19 }
  0x90   : > { %v301_v49 = vadd.f32 %v295_v46, %v275_v48  ;;  %v297_v50 = vmul.f32 %v295_v46, %v275_v48 }
  0x92   : > { %v318_v51 = vcombine.high %v301_v49, %v301_v49  ;;  %v320_v52 = vsel %vm231_vm0, %v301_v49, 0.0  ;;  %v309_v53 = vcombine.high %v297_v50, %v297_v50  ;;  %v311_v55 = vsel %vm231_vm0, %v297_v50, 0.0 }
  0x94   : > { %v321_v54 = vsel %vm231_vm0, %v318_v51, 0.0  ;;  %v312_v56 = vsel %vm231_vm0, %v309_v53, 0.0 }
  0x95   : > { %v322_v57 = vadd.f32 %v321_v54, %v320_v52  ;;  %v313_v58 = vadd.f32 %v312_v56, %v311_v55 }
  0x97   : > { %323 = vadd.xlane.f32.xlu0 %v322_v57 }
  0x9b   : > { %314 = vadd.xlane.f32.xlu0 %v313_v58 }
 0x124   : > { %v324_v59 = vpop.xlane.xlu0 %323 }
 0x125   : > { %v326_v60 = vadd.f32 1e-08, %v324_v59 }
 0x127   : > { %519 = vrcp.f32 %v326_v60 }
 0x128   : > { %v315_v61 = vpop.xlane.xlu0 %314 }
 0x129   : > { %v325_v62 = vmul.f32 2.0, %v315_v61 }
 0x131   : > { %v520_v63 = vpop.eup %519 }
 0x132   : > { %v328_v0 = vmul.f32 %v520_v63, %v325_v62 }
 0x134   : > { %330 = vst.msk [vmem:[%s219_s6] sm:$0xf] %vm329_vm3, %v328_v0 }
 0x135 PF: > { %s18_s14 = sadd.s32 1, %s635_s14   ;;  %s844_s9 = smov %s619_s10 }
 0x136   : > { %p15_p9 = scmp.ge.s32.totalorder %s18_s14, 4   ;;  %s845_s10 = smov %s623_s11 }
 0x137   : > { %s846_s11 = smov %s704_s21  ;;  %s847_s12 = smov %s631_s13 }
 0x138   : > { %s848_s13 = smov %s850_s16  ;;  %17 = sbr.rel (!%p15_p9) target bundleno = 6 (0x6), region = 89 }
 0x13f   :  { %350 = vsyncpa [#allocation5], 1 }
 0x140   :  { %352 = vsyncpa [#allocation5 + $0x1], 1 }
 0x141   :  { %353 = vsyncpa [#allocation7], 1 }
 0x142   :  { %355 = vsyncpa [#allocation7 + $0x1], 1 }

</bundles_post_ra>
